<compile_context>
chip_gen: v7x
topology: tpu7x:2x2x1
jax: 0.10.0
libtpu: 0.0.40
codegen_flags: <defaults>
</compile_context>

<pallas_src>
import jax
import jax.numpy as jnp
from jax.experimental import pallas as pl
from jax.experimental.pallas import tpu as pltpu


def _round_up(x, m):
    return (x + m - 1) // m * m


def _pick_tk(k_pad, max_tk=1792):
    """Largest multiple of 128 <= max_tk that divides k_pad (128 always does)."""
    best = 128
    t = 128
    while t <= min(max_tk, k_pad):
        if k_pad % t == 0:
            best = t
        t += 128
    return best


def prepare_params(w6, b6, w7, b7):
    """One-time weight conversion (cold path): bf16 MXU weights, f32 bias rows,
    W6 rows padded to a multiple of 128 so the kernel never pads weights."""
    k_in, rep = w6.shape
    k_pad = _round_up(k_in, 128)
    w6_bf = w6.astype(jnp.bfloat16)
    if k_pad != k_in:
        w6_bf = jnp.pad(w6_bf, ((0, k_pad - k_in), (0, 0)))
    return (
        w6_bf,                                    # (k_pad, rep)  bf16
        b6.reshape(1, rep).astype(jnp.float32),   # (1, rep)      f32
        w7.astype(jnp.bfloat16),                  # (rep, rep)    bf16
        b7.reshape(1, rep).astype(jnp.float32),   # (1, rep)      f32
    )


def two_mlp_head_kernel(x_ref, w6_ref, b6_ref, w7_ref, b7_ref, o_ref):
    k = pl.program_id(1)

    # fc6 accumulator lives in the f32 output tile (resident across the K
    # axis).  Initialize it with the bias -> no epilogue bias add needed.
    @pl.when(k == 0)
    def _():
        o_ref[...] = jnp.broadcast_to(b6_ref[...], o_ref.shape)

    # fc6 partial product: cast the f32 x tile to bf16 on the VPU, bf16 MXU
    # operands with f32 accumulation.
    o_ref[...] += jnp.dot(
        x_ref[...].astype(jnp.bfloat16),
        w6_ref[...],
        preferred_element_type=jnp.float32,
    )

    # Epilogue: ReLU + fc7 + bias + ReLU, once per M tile.
    @pl.when(k == pl.num_programs(1) - 1)
    def _():
        h = jnp.maximum(o_ref[...], 0.0)
        # dropout(p=0.5, training=False) -> identity
        o = jnp.dot(
            h.astype(jnp.bfloat16), w7_ref[...], preferred_element_type=jnp.float32
        )
        o = jnp.maximum(o + b7_ref[...], 0.0)
        # dropout(p=0.5, training=False) -> identity
        o_ref[...] = o


def two_mlp_head(x, w6_bf, b6_row, w7_bf, b7_row, *, tm=None, tk=None):
    """x: (N, C, H, W) f32.  Params from prepare_params():
    w6_bf (k_pad, rep) bf16, b6_row (1, rep) f32, w7_bf (rep, rep) bf16,
    b7_row (1, rep) f32.  Weights are (in_features, out_features) = torch W.T.
    """
    n = x.shape[0]
    k_in = int(x.shape[1] * x.shape[2] * x.shape[3])
    k_pad = int(w6_bf.shape[0])
    rep = int(w6_bf.shape[1])

    # Tile selection.  Large tm => few M tiles => W6 streamed from HBM at most
    # a couple of times (and >= 2 M tiles for realistic batches keeps both
    # v7x TensorCores busy via the "parallel" axis).
    if tm is None:
        tm = min(512, _round_up(n, 8))
    if tk is None:
        tk = _pick_tk(k_pad)

    n_pad = _round_up(n, tm)
    assert k_pad % tk == 0, "tk must divide the padded K"

    # torch x.flatten(start_dim=1) on contiguous NCHW == this reshape.
    x_flat = x.reshape(n, k_in).astype(jnp.float32)
    if n_pad != n or k_pad != k_in:
        x_flat = jnp.pad(x_flat, ((0, n_pad - n), (0, k_pad - k_in)))

    grid = (n_pad // tm, k_pad // tk)

    # Per-generation VMEM budget (~80% of physical: ~102 MiB on v5e/v6e,
    # ~51 MiB on v7x).  Honest accounting: Pallas double-buffers every input,
    # including the constant-index W7/bias blocks.
    try:
        phys_vmem = int(pltpu.get_tpu_info().vmem_capacity_bytes)
    except Exception:
        phys_vmem = 128 * 1024 * 1024
    cap = int(phys_vmem * 0.80)

    vmem_bytes = (
        2 * tm * tk * 4        # x tiles (f32, double-buffered)
        + 2 * tk * rep * 2     # W6 tiles (bf16, double-buffered)
        + 2 * rep * rep * 2    # W7 (constant index, still double-buffered)
        + 2 * 2 * rep * 4      # biases (double-buffered)
        + 2 * tm * rep * 4     # output/accumulator tile (f32, double-buffered)
    )
    vmem_limit = int(min(cap, max(int(vmem_bytes * 1.25), 8 * 1024 * 1024)))

    out = pl.pallas_call(
        two_mlp_head_kernel,
        out_shape=jax.ShapeDtypeStruct((n_pad, rep), jnp.float32),
        grid=grid,
        in_specs=[
            pl.BlockSpec((tm, tk), lambda m, k: (m, k)),     # x tile (f32)
            pl.BlockSpec((tk, rep), lambda m, k: (k, 0)),    # W6 tile (bf16)
            pl.BlockSpec((1, rep), lambda m, k: (0, 0)),     # b6 (resident)
            pl.BlockSpec((rep, rep), lambda m, k: (0, 0)),   # W7 (resident)
            pl.BlockSpec((1, rep), lambda m, k: (0, 0)),     # b7 (resident)
        ],
        out_specs=pl.BlockSpec((tm, rep), lambda m, k: (m, 0)),
        compiler_params=pltpu.CompilerParams(
            dimension_semantics=("parallel", "arbitrary"),
            vmem_limit_bytes=vmem_limit,
        ),
    )(x_flat, w6_bf, b6_row, w7_bf, b7_row)

    return out[:n].astype(x.dtype)


def reference(x, w6, b6, w7, b7):
    n = x.shape[0]
    x_flat = x.reshape(n, -1).astype(jnp.float32)
    h = jnp.maximum(x_flat @ w6 + b6, 0.0)
    return jnp.maximum(h @ w7 + b7, 0.0)


if __name__ == "__main__":
    # Small shapes consistent with the module:
    #   x: (batch=2, C=4, H=16, W=16) -> in_channels = 4*16*16 = 1024
    #   representation_size = 128
    N, C, H, W = 2, 4, 16, 16
    in_channels = C * H * W
    representation_size = 128

    key = jax.random.PRNGKey(0)
    kx, k6w, k6b, k7w, k7b = jax.random.split(key, 5)

    x = jax.random.normal(kx, (N, C, H, W), dtype=jnp.float32)

    # Deterministic synthetic parameters (stored as (in, out), i.e. torch W.T).
    w6 = jax.random.normal(k6w, (in_channels, representation_size), jnp.float32) * 0.02
    b6 = jax.random.normal(k6b, (representation_size,), jnp.float32) * 0.02
    w7 = jax.random.normal(k7w, (representation_size, representation_size), jnp.float32) * 0.02
    b7 = jax.random.normal(k7b, (representation_size,), jnp.float32) * 0.02

    params = prepare_params(w6, b6, w7, b7)   # one-time bf16 cast / K pad
    y = two_mlp_head(x, *params)
    jax.block_until_ready(y)

    y_ref = reference(x, w6, b6, w7, b7)
    assert y.shape == (N, representation_size)
    # bf16 MXU operands -> relaxed tolerance vs the f32 reference.
    assert jnp.allclose(y, y_ref, atol=3e-2, rtol=3e-2), "mismatch vs reference"

    print("KERNEL_OK")
</pallas_src>

<mosaic_0001>
module attributes {stable_mosaic.version = 11 : i64} {
  func.func @two_mlp_head_kernel(%arg0: i32, %arg1: i32, %arg2: memref<8x1024xf32, #tpu.memory_space<vmem>>, %arg3: memref<1024x128xbf16, #tpu.memory_space<vmem>>, %arg4: memref<1x128xf32, #tpu.memory_space<vmem>>, %arg5: memref<128x128xbf16, #tpu.memory_space<vmem>>, %arg6: memref<1x128xf32, #tpu.memory_space<vmem>>, %arg7: memref<8x128xf32, #tpu.memory_space<vmem>>) attributes {dimension_semantics = [#tpu.dimension_semantics<parallel>, #tpu.dimension_semantics<arbitrary>], iteration_bounds = array<i64: 1, 1>, scalar_prefetch = 0 : i64, scratch_operands = 0 : i64, tpu.core_type = #tpu.core_type<tc>, window_params = [{transform_indices = @transform_0, window_bounds = array<i64: 8, 1024>}, {transform_indices = @transform_1, window_bounds = array<i64: 1024, 128>}, {pipeline_mode = #tpu.pipeline_mode<synchronous>, transform_indices = @transform_2, window_bounds = array<i64: 1, 128>}, {pipeline_mode = #tpu.pipeline_mode<synchronous>, transform_indices = @transform_3, window_bounds = array<i64: 128, 128>}, {pipeline_mode = #tpu.pipeline_mode<synchronous>, transform_indices = @transform_4, window_bounds = array<i64: 1, 128>}, {transform_indices = @transform_5, window_bounds = array<i64: 8, 128>}]} {
    %c0_i32 = arith.constant 0 : i32
    %0 = arith.cmpi eq, %arg1, %c0_i32 : i32
    %1 = arith.extui %0 : i1 to i32
    %c0_i32_0 = arith.constant 0 : i32
    %2 = arith.cmpi ne, %1, %c0_i32_0 : i32
    scf.if %2 {
      %c0_10 = arith.constant 0 : index
      %c0_11 = arith.constant 0 : index
      %13 = vector.load %arg4[%c0_10, %c0_11] : memref<1x128xf32, #tpu.memory_space<vmem>>, vector<1x128xf32>
      %14 = vector.shape_cast %13 : vector<1x128xf32> to vector<1x128xf32>
      %15 = vector.broadcast %14 : vector<1x128xf32> to vector<8x128xf32>
      %c0_12 = arith.constant 0 : index
      %c0_13 = arith.constant 0 : index
      %16 = vector.load %arg7[%c0_12, %c0_13] : memref<8x128xf32, #tpu.memory_space<vmem>>, vector<8x128xf32>
      tpu.vector_store %arg7[%c0_12, %c0_13], %15 {strides = array<i32>} : memref<8x128xf32, #tpu.memory_space<vmem>>, vector<8x128xf32>,
    } else {
    }
    %c0 = arith.constant 0 : index
    %c0_1 = arith.constant 0 : index
    %3 = vector.load %arg7[%c0, %c0_1] : memref<8x128xf32, #tpu.memory_space<vmem>>, vector<8x128xf32>
    %c0_2 = arith.constant 0 : index
    %c0_3 = arith.constant 0 : index
    %4 = vector.load %arg2[%c0_2, %c0_3] : memref<8x1024xf32, #tpu.memory_space<vmem>>, vector<8x1024xf32>
    %5 = arith.truncf %4 : vector<8x1024xf32> to vector<8x1024xbf16>
    %c0_4 = arith.constant 0 : index
    %c0_5 = arith.constant 0 : index
    %6 = vector.load %arg3[%c0_4, %c0_5] : memref<1024x128xbf16, #tpu.memory_space<vmem>>, vector<1024x128xbf16>
    %cst = arith.constant dense<0.000000e+00> : vector<8x128xf32>
    %7 = tpu.matmul %5, %6, %cst {dimension_numbers = #tpu.dot_dimension_numbers<[1], [0], [0], [1], [0, 0, 1, 1], [], []>} : vector<8x1024xbf16>, vector<1024x128xbf16>, vector<8x128xf32> -> vector<8x128xf32>
    %8 = arith.addf %3, %7 : vector<8x128xf32>
    %c0_6 = arith.constant 0 : index
    %c0_7 = arith.constant 0 : index
    %9 = vector.load %arg7[%c0_6, %c0_7] : memref<8x128xf32, #tpu.memory_space<vmem>>, vector<8x128xf32>
    tpu.vector_store %arg7[%c0_6, %c0_7], %8 {strides = array<i32>} : memref<8x128xf32, #tpu.memory_space<vmem>>, vector<8x128xf32>,
    %c0_i32_8 = arith.constant 0 : i32
    %10 = arith.cmpi eq, %arg1, %c0_i32_8 : i32
    %11 = arith.extui %10 : i1 to i32
    %c0_i32_9 = arith.constant 0 : i32
    %12 = arith.cmpi ne, %11, %c0_i32_9 : i32
    scf.if %12 {
      %c0_10 = arith.constant 0 : index
      %c0_11 = arith.constant 0 : index
      %13 = vector.load %arg7[%c0_10, %c0_11] : memref<8x128xf32, #tpu.memory_space<vmem>>, vector<8x128xf32>
      %cst_12 = arith.constant 0.000000e+00 : f32
      %14 = vector.broadcast %cst_12 : f32 to vector<8x128xf32>
      %15 = arith.maximumf %13, %14 : vector<8x128xf32>
      %16 = arith.truncf %15 : vector<8x128xf32> to vector<8x128xbf16>
      %c0_13 = arith.constant 0 : index
      %c0_14 = arith.constant 0 : index
      %17 = vector.load %arg5[%c0_13, %c0_14] : memref<128x128xbf16, #tpu.memory_space<vmem>>, vector<128x128xbf16>
      %cst_15 = arith.constant dense<0.000000e+00> : vector<8x128xf32>
      %18 = tpu.matmul %16, %17, %cst_15 {dimension_numbers = #tpu.dot_dimension_numbers<[1], [0], [0], [1], [0, 0, 1, 1], [], []>} : vector<8x128xbf16>, vector<128x128xbf16>, vector<8x128xf32> -> vector<8x128xf32>
      %c0_16 = arith.constant 0 : index
      %c0_17 = arith.constant 0 : index
      %19 = vector.load %arg6[%c0_16, %c0_17] : memref<1x128xf32, #tpu.memory_space<vmem>>, vector<1x128xf32>
      %20 = vector.broadcast %19 : vector<1x128xf32> to vector<8x128xf32>
      %21 = arith.addf %18, %20 : vector<8x128xf32>
      %cst_18 = arith.constant 0.000000e+00 : f32
      %22 = vector.broadcast %cst_18 : f32 to vector<8x128xf32>
      %23 = arith.maximumf %21, %22 : vector<8x128xf32>
      %c0_19 = arith.constant 0 : index
      %c0_20 = arith.constant 0 : index
      %24 = vector.load %arg7[%c0_19, %c0_20] : memref<8x128xf32, #tpu.memory_space<vmem>>, vector<8x128xf32>
      tpu.vector_store %arg7[%c0_19, %c0_20], %23 {strides = array<i32>} : memref<8x128xf32, #tpu.memory_space<vmem>>, vector<8x128xf32>,
    } else {
    }
    return
  }
  func.func @transform_0(%arg0: i32, %arg1: i32) -> (i32, i32) {
    %c0_i32 = arith.constant 0 : i32
    return %arg0, %arg1 : i32, i32
  }
  func.func @transform_1(%arg0: i32, %arg1: i32) -> (i32, i32) {
    %c0_i32 = arith.constant 0 : i32
    %c0_i32_0 = arith.constant 0 : i32
    return %arg1, %c0_i32 : i32, i32
  }
  func.func @transform_2(%arg0: i32, %arg1: i32) -> (i32, i32) {
    %c0_i32 = arith.constant 0 : i32
    %c0_i32_0 = arith.constant 0 : i32
    %c0_i32_1 = arith.constant 0 : i32
    return %c0_i32, %c0_i32_0 : i32, i32
  }
  func.func @transform_3(%arg0: i32, %arg1: i32) -> (i32, i32) {
    %c0_i32 = arith.constant 0 : i32
    %c0_i32_0 = arith.constant 0 : i32
    %c0_i32_1 = arith.constant 0 : i32
    return %c0_i32, %c0_i32_0 : i32, i32
  }
  func.func @transform_4(%arg0: i32, %arg1: i32) -> (i32, i32) {
    %c0_i32 = arith.constant 0 : i32
    %c0_i32_0 = arith.constant 0 : i32
    %c0_i32_1 = arith.constant 0 : i32
    return %c0_i32, %c0_i32_0 : i32, i32
  }
  func.func @transform_5(%arg0: i32, %arg1: i32) -> (i32, i32) {
    %c0_i32 = arith.constant 0 : i32
    %c0_i32_0 = arith.constant 0 : i32
    return %arg0, %c0_i32 : i32, i32
  }
}

</mosaic_0001>

<bundles_post_ra>
// kernel: tpu_custom_call.1
= control target key start
LH: loop header
LB: loop body
LE: loop exit
PB: predicated region body
PF: predicated region fallthrough
CT: control target
= control target key end

     0   :  { %10 = vsyncpa [#allocation3], 0  ;;  %s1362_s0 = inlined_call_operand.hbm [shape: f32[8,1024], index: 0, kind: input, shape index: {}]   ;;  %s1363_s1 = inlined_call_operand.hbm [shape: bf16[1024,128], index: 1, kind: input, shape index: {}]   ;;  %s1364_s2 = inlined_call_operand.vmem [shape: f32[1,128], index: 2, kind: input, shape index: {}]   ;;  %s1365_s3 = inlined_call_operand.hbm [shape: bf16[128,128], index: 3, kind: input, shape index: {}]   ;;  %s1366_s4 = inlined_call_operand.vmem [shape: f32[1,128], index: 4, kind: input, shape index: {}]   ;;  %s1367_s5 = inlined_call_operand.hbm [shape: f32[8,128], index: 5, kind: output, shape index: {}]  }
   0x1   :  { %11 = vsyncpa [#allocation6], 0 }
   0x2   :  { %12 = vsyncpa [#allocation4], 0  ;;  %s1264_s18 = smov [#allocation5]   ;;  %s1170_s22 = scalar_lea.hbm %s1363_s1, 8192 }
   0x3   :  { %s28_s19 = sshll.u32 %s1264_s18, 4  ;;  %p1171_p0 = scmp.ne.s32.totalorder %s1363_s1, %s1170_s22  ;;  %s29_s19 = int_to_ptr.vmem [resolvable:$true] %s28_s19 }
   0x4   :  { %p1174_p1 = scmp.lt.u32.totalorder %s1170_s22, %s1363_s1 }
   0x6   :  { %p1176_p2 = pnand %p1174_p1, %p1171_p0 }
   0x8   :  { %1179 = shalt.err (!%p1176_p2)
}
   0x9   :  { %s1180_s27 = scalar_lea.vmem %s29_s19, 8192  ;;  %p1185_p4 = scmp.lt.s32.totalorder %s29_s19, %s29_s19 }
   0xa   :  { %p1181_p3 = scmp.ne.s32.totalorder %s29_s19, %s1180_s27  ;;  %p1186_p5 = scmp.lt.s32.totalorder %s1180_s27, %s1180_s27 }
   0xc   :  { %p1187_p6 = por %p1186_p5, %p1185_p4 }
   0xe   :  { %p1188_p7 = pnand %p1187_p6, %p1181_p3 }
  0x10   :  { %1191 = shalt.err (!%p1188_p7)
}
  0x11   :  { %s1265_s28 = smov 64   ;;  %s1266_s29 = smov 4  }
  0x12   :  { %34 = dma.hbm_to_vmem [thread:$0]  %s1363_s1, 8192, %s29_s19, [#allocation6], %s1265_s28, %s1265_s28, %s1266_s29  }
  0x13   :  { %s1267_s7 = smov [#allocation2]   ;;  %s1268_s9 = smov [#allocation7]  }
  0x14   :  { %s19_s8 = sshll.u32 %s1267_s7, 4  ;;  %s42_s10 = sshll.u32 %s1268_s9, 4  ;;  %s20_s8 = int_to_ptr.vmem [resolvable:$true] %s19_s8  ;;  %s43_s10 = int_to_ptr.vmem [resolvable:$true] %s42_s10 }
  0x15   :  { %s1192_s13 = scalar_lea.hbm %s1362_s0, 1024 }
  0x16   :  { %p1193_p8 = scmp.ne.s32.totalorder %s1362_s0, %s1192_s13  ;;  %p1196_p9 = scmp.lt.u32.totalorder %s1192_s13, %s1362_s0 }
  0x18   :  { %p1198_p10 = pnand %p1196_p9, %p1193_p8 }
  0x1a   :  { %1201 = shalt.err (!%p1198_p10)
}
  0x1b   :  { %s1202_s1 = scalar_lea.vmem %s20_s8, 1024  ;;  %p1207_p12 = scmp.lt.s32.totalorder %s20_s8, %s20_s8 }
  0x1c   :  { %p1203_p11 = scmp.ne.s32.totalorder %s20_s8, %s1202_s1  ;;  %p1208_p13 = scmp.lt.s32.totalorder %s1202_s1, %s1202_s1 }
  0x1e   :  { %p1209_p0 = por %p1208_p13, %p1207_p12 }
  0x20   :  { %p1210_p1 = pnand %p1209_p0, %p1203_p11 }
  0x22   :  { %1213 = shalt.err (!%p1210_p1)
}
  0x23   :  { %22 = dma.hbm_to_vmem [thread:$0]  %s1362_s0, 1024, %s20_s8, [#allocation3]  }
  0x24   :  { %s1214_s22 = scalar_lea.hbm %s1365_s3, 1024 }
  0x25   :  { %p1215_p2 = scmp.ne.s32.totalorder %s1365_s3, %s1214_s22  ;;  %p1218_p3 = scmp.lt.u32.totalorder %s1214_s22, %s1365_s3 }
  0x27   :  { %p1220_p4 = pnand %p1218_p3, %p1215_p2 }
  0x29   :  { %1223 = shalt.err (!%p1220_p4)
}
  0x2a   :  { %s1224_s27 = scalar_lea.vmem %s43_s10, 1024  ;;  %p1229_p6 = scmp.lt.s32.totalorder %s43_s10, %s43_s10 }
  0x2b   :  { %p1225_p5 = scmp.ne.s32.totalorder %s43_s10, %s1224_s27  ;;  %p1230_p7 = scmp.lt.s32.totalorder %s1224_s27, %s1224_s27 }
  0x2d   :  { %p1231_p8 = por %p1230_p7, %p1229_p6 }
  0x2f   :  { %p1232_p9 = pnand %p1231_p8, %p1225_p5 }
  0x31   :  { %1235 = shalt.err (!%p1232_p9)
}
  0x32   :  { %48 = dma.hbm_to_vmem [thread:$0]  %s1365_s3, 1024, %s43_s10, [#allocation6], %s1265_s28, %s1265_s28, %s1266_s29  }
  0x33   :  { %1258 = dma.done.wait [#allocation3], 1024  }
  0x34   :  { %1259 = vsyncadd [#allocation3], 4294966272 }
  0x35   :  { %1260 = dma.done.wait [#allocation6], 9216  }
  0x36   :  { %1261 = vsyncadd [#allocation6], 4294958080  ;;  %v1098_v0 = vld [vmem:[#allocation5 + $0x40] sm:$0xff]   ;;  %v1102_v4 = vld [vmem:[#allocation5 + $0x48] sm:$0xff]   ;;  %vm1270_vm0 = vmmov 0   ;;  %s1271_s7 = smov [#allocation8]  }
  0x37   :  { %v1099_v1 = vld [vmem:[#allocation5 + $0xc0] sm:$0xff]   ;;  %973 = vmatprep.subr.bf16.mxu0 %v1098_v0  ;;  %v1103_v5 = vld [vmem:[#allocation5 + $0xc8] sm:$0xff]   ;;  %v1106_v8 = vld [vmem:[#allocation5 + $0x50] sm:$0xff]   ;;  %s889_s8 = sshll.u32 %s1271_s7, 4  ;;  %s890_s8 = int_to_ptr.vmem [resolvable:$true] %s889_s8 }
  0x38   :  { %v1100_v2 = vld [vmem:[#allocation5] sm:$0xff]   ;;  %995 = vmatprep.subr.bf16.mxu1 %v1099_v1  ;;  %v1104_v6 = vld [vmem:[#allocation5 + $0x8] sm:$0xff]   ;;  %v1107_v9 = vld [vmem:[#allocation5 + $0xd0] sm:$0xff]   ;;  %p1241_p11 = scmp.lt.s32.totalorder %s890_s8, %s890_s8 }
  0x39   :  { %v1101_v3 = vld [vmem:[#allocation5 + $0x80] sm:$0xff]   ;;  %974 = vmatpush3.bf16.msra.mxu0 %v1100_v2  ;;  %v1105_v7 = vld [vmem:[#allocation5 + $0x88] sm:$0xff]   ;;  %v1108_v10 = vld [vmem:[#allocation5 + $0x10] sm:$0xff]  }
  0x3a   :  { %996 = vmatpush3.bf16.msra.mxu1 %v1101_v3  ;;  %975 = vmatprep.subr.bf16.mxu0 %v1102_v4  ;;  %v1109_v11 = vld [vmem:[#allocation5 + $0x90] sm:$0xff]   ;;  %v1110_v12 = vld [vmem:[#allocation5 + $0x58] sm:$0xff]   ;;  %v1114_v16 = vld [vmem:[#allocation5 + $0x60] sm:$0xff]  }
  0x3b   :  { %997 = vmatprep.subr.bf16.mxu1 %v1103_v5  ;;  %v1111_v13 = vld [vmem:[#allocation5 + $0xd8] sm:$0xff]   ;;  %v1115_v17 = vld [vmem:[#allocation5 + $0xe0] sm:$0xff]   ;;  %v1118_v20 = vld [vmem:[#allocation5 + $0x68] sm:$0xff]  }
  0x3c   :  { %v1112_v14 = vld [vmem:[#allocation5 + $0x18] sm:$0xff]   ;;  %v1116_v18 = vld [vmem:[#allocation5 + $0x20] sm:$0xff]   ;;  %v1119_v21 = vld [vmem:[#allocation5 + $0xe8] sm:$0xff]  }
  0x3d   :  { %976 = vmatpush3.bf16.msra.mxu0 %v1104_v6  ;;  %v1113_v15 = vld [vmem:[#allocation5 + $0x98] sm:$0xff]   ;;  %v1117_v19 = vld [vmem:[#allocation5 + $0xa0] sm:$0xff]   ;;  %v1120_v22 = vld [vmem:[#allocation5 + $0x28] sm:$0xff]  }
  0x3e   :  { %998 = vmatpush3.bf16.msra.mxu1 %v1105_v7  ;;  %977 = vmatprep.subr.bf16.mxu0 %v1106_v8  ;;  %v1121_v23 = vld [vmem:[#allocation5 + $0xa8] sm:$0xff]   ;;  %v1122_v24 = vld [vmem:[#allocation5 + $0x70] sm:$0xff]   ;;  %v1126_v28 = vld [vmem:[#allocation5 + $0x78] sm:$0xff]  }
  0x3f   :  { %999 = vmatprep.subr.bf16.mxu1 %v1107_v9  ;;  %v1123_v25 = vld [vmem:[#allocation5 + $0xf0] sm:$0xff]   ;;  %v1127_v29 = vld [vmem:[#allocation5 + $0xf8] sm:$0xff]   ;;  %v75_v32 = vld [vmem:[#allocation2 + $0x8] sm:$0xff] }
  0x40   :  { %v1124_v26 = vld [vmem:[#allocation5 + $0x30] sm:$0xff]   ;;  %v1128_v30 = vld [vmem:[#allocation5 + $0x38] sm:$0xff]   ;;  %v74_v34 = vld [vmem:[#allocation2] sm:$0xff]  ;;  %v83_v35 = vpack.c.bf16 %v75_v32, %v75_v32 }
  0x41   :  { %978 = vmatpush3.bf16.msra.mxu0 %v1108_v10  ;;  %v1125_v27 = vld [vmem:[#allocation5 + $0xb0] sm:$0xff]   ;;  %v1129_v31 = vld [vmem:[#allocation5 + $0xb8] sm:$0xff]   ;;  %v82_v37 = vpack.c.bf16 %v74_v34, %v74_v34  ;;  %v1130_v40 = vld [vmem:[#allocation5 + $0x140] sm:$0xff]  }
  0x42   :  { %1000 = vmatpush3.bf16.msra.mxu1 %v1109_v11  ;;  %979 = vmatprep.subr.bf16.mxu0 %v1110_v12  ;;  %v77_v33 = vld [vmem:[#allocation2 + $0x18] sm:$0xff]  ;;  %v76_v38 = vld [vmem:[#allocation2 + $0x10] sm:$0xff]  ;;  %v1131_v41 = vld [vmem:[#allocation5 + $0x1c0] sm:$0xff]  }
  0x43   :  { %1001 = vmatprep.subr.bf16.mxu1 %v1111_v13  ;;  %v85_v36 = vpack.c.bf16 %v77_v33, %v77_v33  ;;  %v84_v39 = vpack.c.bf16 %v76_v38, %v76_v38  ;;  %634 = vmatprep.mubr.bf16.mxu0 %v83_v35  ;;  %v1132_v42 = vld [vmem:[#allocation5 + $0x100] sm:$0xff]   ;;  %v1134_v44 = vld [vmem:[#allocation5 + $0x148] sm:$0xff]   ;;  %v1138_v48 = vld [vmem:[#allocation5 + $0x150] sm:$0xff]  }
  0x44   :  { %v1133_v43 = vld [vmem:[#allocation5 + $0x180] sm:$0xff]   ;;  %v1135_v45 = vld [vmem:[#allocation5 + $0x1c8] sm:$0xff]   ;;  %v1139_v49 = vld [vmem:[#allocation5 + $0x1d0] sm:$0xff]  }
  0x45   :  { %980 = vmatpush3.bf16.msra.mxu0 %v1112_v14  ;;  %674 = vmatprep.mubr.bf16.mxu1 %v85_v36  ;;  %v1136_v46 = vld [vmem:[#allocation5 + $0x108] sm:$0xff]   ;;  %v1140_v50 = vld [vmem:[#allocation5 + $0x110] sm:$0xff]   ;;  %v1142_v52 = vld [vmem:[#allocation5 + $0x158] sm:$0xff]  }
  0x46   :  { %1002 = vmatpush3.bf16.msra.mxu1 %v1113_v15  ;;  %981 = vmatprep.subr.bf16.mxu0 %v1114_v16  ;;  %v1137_v47 = vld [vmem:[#allocation5 + $0x188] sm:$0xff]   ;;  %v1141_v51 = vld [vmem:[#allocation5 + $0x190] sm:$0xff]   ;;  %v1143_v53 = vld [vmem:[#allocation5 + $0x1d8] sm:$0xff]  }
  0x47   :  { %1003 = vmatprep.subr.bf16.mxu1 %v1115_v17  ;;  %v1144_v54 = vld [vmem:[#allocation5 + $0x118] sm:$0xff]   ;;  %v1146_v56 = vld [vmem:[#allocation5 + $0x160] sm:$0xff]   ;;  %v1150_v60 = vld [vmem:[#allocation5 + $0x168] sm:$0xff]   ;;  %v1269_v17 = vmov 0.0  }
  0x48   :  { %v1145_v55 = vld [vmem:[#allocation5 + $0x198] sm:$0xff]   ;;  %v1147_v57 = vld [vmem:[#allocation5 + $0x1e0] sm:$0xff]   ;;  %v1151_v61 = vld [vmem:[#allocation5 + $0x1e8] sm:$0xff]  }
  0x49   :  { %982 = vmatpush3.bf16.msra.mxu0 %v1116_v18  ;;  %v1148_v58 = vld [vmem:[#allocation5 + $0x120] sm:$0xff]   ;;  %v1152_v62 = vld [vmem:[#allocation5 + $0x128] sm:$0xff]   ;;  %v1154_v0 = vld [vmem:[#allocation5 + $0x170] sm:$0xff]  }
  0x4a   :  { %1004 = vmatpush3.bf16.msra.mxu1 %v1117_v19  ;;  %983 = vmatprep.subr.bf16.mxu0 %v1118_v20  ;;  %v1149_v59 = vld [vmem:[#allocation5 + $0x1a0] sm:$0xff]   ;;  %v1153_v63 = vld [vmem:[#allocation5 + $0x1a8] sm:$0xff]   ;;  %v1155_v1 = vld [vmem:[#allocation5 + $0x1f0] sm:$0xff]  }
  0x4b   :  { %1005 = vmatprep.subr.bf16.mxu1 %v1119_v21  ;;  %v1156_v2 = vld [vmem:[#allocation5 + $0x130] sm:$0xff]   ;;  %v1158_v4 = vld [vmem:[#allocation5 + $0x178] sm:$0xff]   ;;  %v79_v8 = vld [vmem:[#allocation2 + $0x28] sm:$0xff] }
  0x4c   :  { %v1157_v3 = vld [vmem:[#allocation5 + $0x1b0] sm:$0xff]   ;;  %v1159_v5 = vld [vmem:[#allocation5 + $0x1f8] sm:$0xff]   ;;  %v87_v10 = vpack.c.bf16 %v79_v8, %v79_v8  ;;  %v78_v12 = vld [vmem:[#allocation2 + $0x20] sm:$0xff] }
  0x4d   :  { %984 = vmatpush3.bf16.msra.mxu0 %v1120_v22  ;;  %v1160_v6 = vld [vmem:[#allocation5 + $0x138] sm:$0xff]   ;;  %v80_v13 = vld [vmem:[#allocation2 + $0x30] sm:$0xff]  ;;  %v86_v14 = vpack.c.bf16 %v78_v12, %v78_v12  ;;  %v1162_v16 = vld [vmem:[#allocation7] sm:$0xff]  }
  0x4e   :  { %1006 = vmatpush3.bf16.msra.mxu1 %v1121_v23  ;;  %985 = vmatprep.subr.bf16.mxu0 %v1122_v24  ;;  %v1161_v7 = vld [vmem:[#allocation5 + $0x1b8] sm:$0xff]   ;;  %v88_v15 = vpack.c.bf16 %v80_v13, %v80_v13  ;;  %v1163_v18 = vld [vmem:[#allocation7 + $0x8] sm:$0xff]   ;;  %v1164_v19 = vld [vmem:[#allocation7 + $0x10] sm:$0xff]  }
  0x4f   :  { %1007 = vmatprep.subr.bf16.mxu1 %v1123_v25  ;;  %v81_v9 = vld [vmem:[#allocation2 + $0x38] sm:$0xff]  ;;  %v1166_v21 = vld [vmem:[#allocation7 + $0x20] sm:$0xff]   ;;  %v1167_v22 = vld [vmem:[#allocation7 + $0x28] sm:$0xff]  }
  0x50   :  { %v89_v11 = vpack.c.bf16 %v81_v9, %v81_v9  ;;  %v1165_v20 = vld [vmem:[#allocation7 + $0x18] sm:$0xff]   ;;  %v1168_v23 = vld [vmem:[#allocation7 + $0x30] sm:$0xff]  }
  0x51   :  { %986 = vmatpush3.bf16.msra.mxu0 %v1124_v26  ;;  %v1169_v24 = vld [vmem:[#allocation7 + $0x38] sm:$0xff]  }
  0x52   :  { %1008 = vmatpush3.bf16.msra.mxu1 %v1125_v27  ;;  %987 = vmatprep.subr.bf16.mxu0 %v1126_v28 }
  0x53   :  { %1009 = vmatprep.subr.bf16.mxu1 %v1127_v29 }
  0x55   :  { %988 = vmatpush3.bf16.msra.mxu0 %v1128_v30 }
  0x56   :  { %1010 = vmatpush3.bf16.msra.mxu1 %v1129_v31  ;;  %1017 = vmatprep.subr.bf16.mxu0 %v1130_v40 }
  0x57   :  { %1039 = vmatprep.subr.bf16.mxu1 %v1131_v41 }
  0x58   :  { %635 = vmatmul.mubr.bf16.vlgmr.msra.gmra.mrb[0].mxu0 %v82_v37 }
  0x59   :  { %675 = vmatmul.mubr.bf16.vlgmr.msra.gmra.mrb[0].mxu1 %v84_v39  ;;  %1018 = vmatpush3.bf16.msra.mxu0 %v1132_v42 }
  0x5a   :  { %1040 = vmatpush3.bf16.msra.mxu1 %v1133_v43  ;;  %1019 = vmatprep.subr.bf16.mxu0 %v1134_v44 }
  0x5b   :  { %1041 = vmatprep.subr.bf16.mxu1 %v1135_v45  ;;  %714 = vmatprep.mubr.bf16.mxu0 %v87_v10 }
  0x5c   :  { %754 = vmatprep.mubr.bf16.mxu1 %v89_v11 }
  0x5d   :  { %1020 = vmatpush3.bf16.msra.mxu0 %v1136_v46 }
  0x5e   :  { %1042 = vmatpush3.bf16.msra.mxu1 %v1137_v47  ;;  %1021 = vmatprep.subr.bf16.mxu0 %v1138_v48  ;;  %v899_v47 = vld [vmem:[%s1364_s2] ss:$0 sm:$0xff]  ;;  %s1236_s2 = scalar_lea.vmem %s890_s8, 128 }
  0x5f   :  { %1043 = vmatprep.subr.bf16.mxu1 %v1139_v49  ;;  %p1237_p10 = scmp.ne.s32.totalorder %s890_s8, %s1236_s2  ;;  %p1242_p12 = scmp.lt.s32.totalorder %s1236_s2, %s1236_s2 }
  0x61   :  { %1022 = vmatpush3.bf16.msra.mxu0 %v1140_v50  ;;  %p1243_p13 = por %p1242_p12, %p1241_p11 }
  0x62   :  { %1044 = vmatpush3.bf16.msra.mxu1 %v1141_v51  ;;  %1023 = vmatprep.subr.bf16.mxu0 %v1142_v52  ;;  %v964_v52 = vld [vmem:[%s1366_s4] ss:$0 sm:$0xff] }
  0x63   :  { %1045 = vmatprep.subr.bf16.mxu1 %v1143_v53  ;;  %p1244_p0 = pnand %p1243_p13, %p1237_p10 }
  0x65   :  { %1024 = vmatpush3.bf16.msra.mxu0 %v1144_v54 }
  0x66   :  { %1046 = vmatpush3.bf16.msra.mxu1 %v1145_v55  ;;  %1025 = vmatprep.subr.bf16.mxu0 %v1146_v56 }
  0x67   :  { %1047 = vmatprep.subr.bf16.mxu1 %v1147_v57 }
  0x69   :  { %1026 = vmatpush3.bf16.msra.mxu0 %v1148_v58 }
  0x6a   :  { %1048 = vmatpush3.bf16.msra.mxu1 %v1149_v59  ;;  %1027 = vmatprep.subr.bf16.mxu0 %v1150_v60 }
  0x6b   :  { %1049 = vmatprep.subr.bf16.mxu1 %v1151_v61 }
  0x6d   :  { %1028 = vmatpush3.bf16.msra.mxu0 %v1152_v62 }
  0x6e   :  { %1050 = vmatpush3.bf16.msra.mxu1 %v1153_v63  ;;  %1029 = vmatprep.subr.bf16.mxu0 %v1154_v0 }
  0x6f   :  { %1051 = vmatprep.subr.bf16.mxu1 %v1155_v1 }
  0x71   :  { %1030 = vmatpush3.bf16.msra.mxu0 %v1156_v2 }
  0x72   :  { %1052 = vmatpush3.bf16.msra.mxu1 %v1157_v3  ;;  %1031 = vmatprep.subr.bf16.mxu0 %v1158_v4 }
  0x73   :  { %1053 = vmatprep.subr.bf16.mxu1 %v1159_v5 }
  0x75   :  { %1032 = vmatpush3.bf16.msra.mxu0 %v1160_v6 }
  0x76   :  { %1054 = vmatpush3.bf16.msra.mxu1 %v1161_v7  ;;  %1070 = vmatprep.subr.bf16.mxu0 %v1269_v17 }
  0x78   :  { %715 = vmatmul.mubr.bf16.vlgmr.msra.gmra.mrb[4].mxu0 %v86_v14 }
  0x79   :  { %755 = vmatmul.mubr.bf16.vlgmr.msra.gmra.mrb[4].mxu1 %v88_v15  ;;  %1071 = vmatpush3.bf16.msra.mxu0 %v1162_v16 }
  0x7a   :  { %1072 = vmatprep.subr.bf16.mxu0 %v1269_v17  ;;  %1086 = vmatprep.mubr.msk.bf16.mxu0 %vm1270_vm0, %v1269_v17 }
  0x7d   :  { %1073 = vmatpush3.bf16.msra.mxu0 %v1163_v18 }
  0x7e   :  { %1074 = vmatprep.subr.bf16.mxu0 %v1269_v17 }
  0x81   :  { %1075 = vmatpush3.bf16.msra.mxu0 %v1164_v19 }
  0x82   :  { %1076 = vmatprep.subr.bf16.mxu0 %v1269_v17 }
  0x85   :  { %1077 = vmatpush3.bf16.msra.mxu0 %v1165_v20 }
  0x86   :  { %1078 = vmatprep.subr.bf16.mxu0 %v1269_v17 }
  0x89   :  { %1079 = vmatpush3.bf16.msra.mxu0 %v1166_v21 }
  0x8a   :  { %1080 = vmatprep.subr.bf16.mxu0 %v1269_v17 }
  0x8d   :  { %1081 = vmatpush3.bf16.msra.mxu0 %v1167_v22 }
  0x8e   :  { %1082 = vmatprep.subr.bf16.mxu0 %v1269_v17 }
  0x91   :  { %1083 = vmatpush3.bf16.msra.mxu0 %v1168_v23 }
  0x92   :  { %1084 = vmatprep.subr.bf16.mxu0 %v1269_v17 }
  0x95   :  { %1085 = vmatpush3.bf16.msra.mxu0 %v1169_v24 }
 0x12b   :  { %v989_v25 = vpop.f32.mrb[0].mxu0 }
 0x12c   :  { %v1011_v26 = vpop.f32.mrb[0].mxu1  ;;  %v990_v27 = vpop.f32.mrb[1].mxu0 }
 0x12d   :  { %v1012_v28 = vpop.f32.mrb[1].mxu1  ;;  %v991_v29 = vadd.f32 %v990_v27, %v989_v25  ;;  %v992_v31 = vpop.f32.mrb[2].mxu0 }
 0x12e   :  { %v1013_v30 = vadd.f32 %v1012_v28, %v1011_v26  ;;  %v1014_v32 = vpop.f32.mrb[2].mxu1  ;;  %v993_v33 = vpop.f32.mrb[3].mxu0 }
 0x12f   :  { %v1015_v34 = vpop.f32.mrb[3].mxu1 }
 0x130   :  { %v677_v35 = vadd.f32 %v1013_v30, %v991_v29 }
 0x14b   :  { %v1033_v36 = vpop.f32.mrb[4].mxu0 }
 0x14c   :  { %v1055_v37 = vpop.f32.mrb[4].mxu1  ;;  %v1034_v38 = vpop.f32.mrb[5].mxu0 }
 0x14d   :  { %v1035_v39 = vadd.f32 %v1034_v38, %v1033_v36  ;;  %v1056_v40 = vpop.f32.mrb[5].mxu1  ;;  %v1036_v41 = vpop.f32.mrb[6].mxu0 }
 0x14e   :  { %v1057_v42 = vadd.f32 %v1056_v40, %v1055_v37  ;;  %v1058_v43 = vpop.f32.mrb[6].mxu1  ;;  %v1037_v44 = vpop.f32.mrb[7].mxu0 }
 0x14f   :  { %v717_v45 = vadd.f32 %v1035_v39, %v677_v35  ;;  %v1059_v46 = vpop.f32.mrb[7].mxu1 }
 0x151   :  { %v757_v48 = vadd.f32 %v1057_v42, %v717_v45 }
 0x153   :  { %v762_v49 = vadd.f32 %v899_v47, %v757_v48 }
 0x155   :  { %v768_v50 = vmax.f32 %v762_v49, 0.0 }
 0x157   :  { %v769_v51 = vpack.c.bf16 %v768_v50, %v768_v50 }
 0x159   :  { %1087 = vmatmul.mubr.bf16.vlgmr.msra.gmra.mrb[8].mxu0 %v769_v51 }
 0x22c   :  { %v875_v53 = vpop.f32.mrb[8].mxu0 }
 0x22d   :  { %v876_v54 = vadd.f32 %v964_v52, %v875_v53  ;;  %v1088_v55 = vpop.f32.mrb[9].mxu0 }
 0x22e   :  { %v878_v56 = vpop.f32.mrb[10].mxu0 }
 0x22f   :  { %v881_v57 = vmax.f32 %v876_v54, 0.0  ;;  %v1089_v58 = vpop.f32.mrb[11].mxu0 }
 0x231   :  { %882 = vst [vmem:[#allocation8] sm:$0xff] %v881_v57 }
 0x232   :  { %1247 = shalt.err (!%p1244_p0)
}
 0x233   :  { %s1248_s4 = scalar_lea.hbm %s1367_s5, 128 }
 0x234   :  { %p1249_p1 = scmp.ne.s32.totalorder %s1367_s5, %s1248_s4  ;;  %p1252_p2 = scmp.lt.u32.totalorder %s1248_s4, %s1367_s5 }
 0x236   :  { %p1254_p3 = pnand %p1252_p2, %p1249_p1 }
 0x238   :  { %1257 = shalt.err (!%p1254_p3)
}
 0x239   :  { %892 = dma.vmem_to_hbm [thread:$0]  %s890_s8, 128, %s1367_s5, [#allocation4]  }
 0x23a   :  { %1262 = dma.done.wait [#allocation4], 128  }
 0x23b   :  { %1263 = vsyncadd [#allocation4], 4294967168 }
 0x23c   :  { %896 = vsyncpa [#allocation3], 1 }
 0x23d   :  { %897 = vsyncpa [#allocation6], 1 }
 0x23e   :  { %898 = vsyncpa [#allocation4], 1 }

</bundles_post_ra>
